<compile_context>
chip_gen: v6e
topology: v6e:2x2x1
jax: 0.10.0
libtpu: 0.0.40
codegen_flags: <defaults>
</compile_context>

<pallas_src>
import functools

import jax
import jax.numpy as jnp
from jax import lax
from jax.experimental import pallas as pl
from jax.experimental.pallas import tpu as pltpu


def _pick_row_tile(Ho, Wo):
    """Pick an output-row tile TH (divisor of Ho) such that TH*Wo is a
    multiple of 128 (lane-dense output block) and there are >= 2 row tiles;
    fall back to the full height otherwise (full-dim block is always legal)."""
    candidates = [
        th for th in range(1, Ho)
        if Ho % th == 0                       # TH divides Ho
        and (th * Wo) % 128 == 0              # lane-dense output block
        and Ho // th >= 2                     # give the megacore >= 2 steps
        and th * Wo * 4 <= (1 << 21)          # keep the output tile small
    ]
    return max(candidates) if candidates else Ho


def _conv_block_kernel(x_ref, w_ref, b_ref, o_ref, *, K, stride, TH, Wo, Cin):
    """Grid step = (batch n, output-row tile r).

    x_ref: (1, Hp, Wp, Cin)     replication-padded input (full spatial extent)
    w_ref: (Cout, K*K*Cin)      conv weight, columns ordered (kh, kw, cin)
    b_ref: (Cout, 1)            bias column
    o_ref: (1, Cout, TH*Wo)     NCHW-flat output tile (lane-dense store)
    """
    r = pl.program_id(1)
    row0 = pl.multiple_of(r * TH * stride, TH * stride)

    # --- im2col: one (TH*Wo, K*K*Cin) activation matrix from K*K shifted windows
    taps = []
    for kh in range(K):
        for kw in range(K):
            if stride == 1:
                idx_h = pl.ds(row0 + kh, TH)
                idx_w = pl.ds(kw, Wo)
            else:
                # TODO(synk): for stride > 1, pre-striding the padded input in
                # the wrapper would avoid strided sublane gathers here.
                idx_h = pl.ds(row0 + kh, TH, stride)
                idx_w = pl.ds(kw, Wo, stride)
            patch = x_ref[0, idx_h, idx_w, :]               # (TH, Wo, Cin)
            taps.append(patch.reshape(TH * Wo, Cin))        # collapse leading dims
    im2col = jnp.concatenate(taps, axis=1)                  # (TH*Wo, K*K*Cin)

    # --- single fused MXU contraction; A @ B^T gives (Cout, TH*Wo) directly
    acc = lax.dot_general(
        w_ref[...], im2col,
        dimension_numbers=(((1,), (1,)), ((), ())),
        preferred_element_type=jnp.float32,
    )                                                       # (Cout, TH*Wo)

    # --- bias + ReLU in f32 on the dense tile, then a full-width store
    acc = acc + b_ref[...].astype(jnp.float32)
    o_ref[0] = jnp.maximum(acc, 0.0).astype(o_ref.dtype)


def conv_block_forward(x_nchw, weight, bias, *, kernel_size, stride):
    """Equivalent of ConvBlock.forward with activation=ReLU.

    x_nchw: (N, Cin, H, W)  float32
    weight: (Cout, Cin, K, K)  (PyTorch Conv2d layout)
    bias:   (Cout,)
    returns (N, Cout, Ho, Wo)
    """
    N, Cin, H, W = x_nchw.shape
    Cout = weight.shape[0]
    K = kernel_size
    padding = K // 2

    # --- glue: replication pad (ReplicationPad2d == edge padding) + NHWC layout
    x_nhwc = jnp.transpose(x_nchw, (0, 2, 3, 1))                        # N,H,W,C
    x_pad = jnp.pad(
        x_nhwc, ((0, 0), (padding, padding), (padding, padding), (0, 0)),
        mode="edge",
    ).astype(jnp.float32)
    Hp, Wp = H + 2 * padding, W + 2 * padding
    Ho = (Hp - K) // stride + 1
    Wo = (Wp - K) // stride + 1

    TH = _pick_row_tile(Ho, Wo)
    n_row_tiles = Ho // TH

    # weight (Cout, Cin, K, K) -> (Cout, K, K, Cin) -> (Cout, K*K*Cin)
    # (column order (kh, kw, cin) matches the im2col column order in-kernel)
    w_flat = jnp.transpose(weight, (0, 2, 3, 1)).reshape(
        Cout, K * K * Cin).astype(jnp.float32)
    b_col = bias.reshape(Cout, 1).astype(jnp.float32)

    kernel = functools.partial(
        _conv_block_kernel, K=K, stride=stride, TH=TH, Wo=Wo, Cin=Cin)

    flops = 2 * N * Ho * Wo * K * K * Cin * Cout
    bytes_accessed = (x_pad.size + w_flat.size + b_col.size
                      + N * Cout * Ho * Wo) * 4

    out_flat = pl.pallas_call(
        kernel,
        out_shape=jax.ShapeDtypeStruct((N, Cout, Ho * Wo), jnp.float32),
        grid_spec=pltpu.PrefetchScalarGridSpec(
            num_scalar_prefetch=0,
            grid=(N, n_row_tiles),
            in_specs=[
                # Full padded image per batch; block index constant along r,
                # so it is DMA'd once per batch element.
                pl.BlockSpec((1, Hp, Wp, Cin), lambda n, r: (n, 0, 0, 0)),
                pl.BlockSpec((Cout, K * K * Cin), lambda n, r: (0, 0)),
                pl.BlockSpec((Cout, 1), lambda n, r: (0, 0)),
            ],
            out_specs=pl.BlockSpec((1, Cout, TH * Wo), lambda n, r: (n, 0, r)),
        ),
        compiler_params=pltpu.CompilerParams(
            # batch and row-tile axes are independent -> megacore friendly.
            # (vmem_limit_bytes left at default: tiles here are tiny; raise it
            #  when scaling spatial tiles on larger inputs.)
            dimension_semantics=("parallel", "parallel"),
        ),
        cost_estimate=pl.CostEstimate(
            flops=flops, transcendentals=0, bytes_accessed=bytes_accessed),
    )(x_pad, w_flat, b_col)

    # glue: already NCHW-ordered, just un-flatten the spatial dim.
    return out_flat.reshape(N, Cout, Ho, Wo)


def _reference(x_nchw, weight, bias, *, kernel_size, stride):
    """Pure-JAX reference (lax conv on the replication-padded input)."""
    K = kernel_size
    padding = K // 2
    x_pad = jnp.pad(
        x_nchw, ((0, 0), (0, 0), (padding, padding), (padding, padding)),
        mode="edge",
    )
    out = lax.conv_general_dilated(
        x_pad, weight,
        window_strides=(stride, stride),
        padding="VALID",
        dimension_numbers=("NCHW", "OIHW", "NCHW"),
    )
    out = out + bias.reshape(1, -1, 1, 1)
    return jnp.maximum(out, 0.0)


if __name__ == "__main__":
    # ConvBlock(input_size=4, output_size=8, kernel_size=3, stride=1, activation=ReLU)
    N, Cin, H, W = 2, 4, 16, 16
    Cout, K, stride = 8, 3, 1

    key = jax.random.PRNGKey(0)
    kx, kw, kb = jax.random.split(key, 3)
    x = jax.random.normal(kx, (N, Cin, H, W), dtype=jnp.float32)
    weight = jax.random.normal(kw, (Cout, Cin, K, K), dtype=jnp.float32) * 0.1
    bias = jax.random.normal(kb, (Cout,), dtype=jnp.float32) * 0.1

    out = conv_block_forward(x, weight, bias, kernel_size=K, stride=stride)
    out = jax.block_until_ready(out)

    ref = _reference(x, weight, bias, kernel_size=K, stride=stride)
    assert out.shape == ref.shape, (out.shape, ref.shape)
    assert jnp.allclose(out, ref, atol=1e-4, rtol=1e-4), "mismatch vs reference"

    print("KERNEL_OK")
</pallas_src>

<mosaic_0001>
module attributes {stable_mosaic.version = 11 : i64} {
  func.func @_conv_block_kernel(%arg0: i32, %arg1: i32, %arg2: memref<1x18x18x4xf32, #tpu.memory_space<vmem>>, %arg3: memref<8x36xf32, #tpu.memory_space<vmem>>, %arg4: memref<8x1xf32, #tpu.memory_space<vmem>>, %arg5: memref<1x8x128xf32, #tpu.memory_space<vmem>>) attributes {dimension_semantics = [#tpu.dimension_semantics<parallel>, #tpu.dimension_semantics<parallel>], iteration_bounds = array<i64: 2, 2>, scalar_prefetch = 0 : i64, scratch_operands = 0 : i64, tpu.core_type = #tpu.core_type<tc>, window_params = [{transform_indices = @transform_0, window_bounds = array<i64: 1, 18, 18, 4>}, {pipeline_mode = #tpu.pipeline_mode<synchronous>, transform_indices = @transform_1, window_bounds = array<i64: 8, 36>}, {pipeline_mode = #tpu.pipeline_mode<synchronous>, transform_indices = @transform_2, window_bounds = array<i64: 8, 1>}, {transform_indices = @transform_3, window_bounds = array<i64: 1, 8, 128>}]} {
    %c8_i32 = arith.constant 8 : i32
    %0 = arith.muli %arg1, %c8_i32 : i32
    %c1_i32 = arith.constant 1 : i32
    %1 = arith.muli %0, %c1_i32 : i32
    %2 = tpu.assume_multiple %1, 8 : i32
    %c0_i32 = arith.constant 0 : i32
    %3 = arith.addi %2, %c0_i32 : i32
    %c0 = arith.constant 0 : index
    %4 = arith.index_cast %3 : i32 to index
    %c0_0 = arith.constant 0 : index
    %c0_1 = arith.constant 0 : index
    %5 = vector.load %arg2[%c0, %4, %c0_0, %c0_1] : memref<1x18x18x4xf32, #tpu.memory_space<vmem>>, vector<1x8x16x4xf32>
    %6 = vector.shape_cast %5 : vector<1x8x16x4xf32> to vector<8x16x4xf32>
    %7 = vector.shape_cast %6 : vector<8x16x4xf32> to vector<128x4xf32>
    %c0_i32_2 = arith.constant 0 : i32
    %8 = arith.addi %2, %c0_i32_2 : i32
    %c0_3 = arith.constant 0 : index
    %9 = arith.index_cast %8 : i32 to index
    %c1 = arith.constant 1 : index
    %c0_4 = arith.constant 0 : index
    %10 = vector.load %arg2[%c0_3, %9, %c1, %c0_4] : memref<1x18x18x4xf32, #tpu.memory_space<vmem>>, vector<1x8x16x4xf32>
    %11 = vector.shape_cast %10 : vector<1x8x16x4xf32> to vector<8x16x4xf32>
    %12 = vector.shape_cast %11 : vector<8x16x4xf32> to vector<128x4xf32>
    %c0_i32_5 = arith.constant 0 : i32
    %13 = arith.addi %2, %c0_i32_5 : i32
    %c0_6 = arith.constant 0 : index
    %14 = arith.index_cast %13 : i32 to index
    %c2 = arith.constant 2 : index
    %c0_7 = arith.constant 0 : index
    %15 = vector.load %arg2[%c0_6, %14, %c2, %c0_7] : memref<1x18x18x4xf32, #tpu.memory_space<vmem>>, vector<1x8x16x4xf32>
    %16 = vector.shape_cast %15 : vector<1x8x16x4xf32> to vector<8x16x4xf32>
    %17 = vector.shape_cast %16 : vector<8x16x4xf32> to vector<128x4xf32>
    %c1_i32_8 = arith.constant 1 : i32
    %18 = arith.addi %2, %c1_i32_8 : i32
    %c0_9 = arith.constant 0 : index
    %19 = arith.index_cast %18 : i32 to index
    %c0_10 = arith.constant 0 : index
    %c0_11 = arith.constant 0 : index
    %20 = vector.load %arg2[%c0_9, %19, %c0_10, %c0_11] : memref<1x18x18x4xf32, #tpu.memory_space<vmem>>, vector<1x8x16x4xf32>
    %21 = vector.shape_cast %20 : vector<1x8x16x4xf32> to vector<8x16x4xf32>
    %22 = vector.shape_cast %21 : vector<8x16x4xf32> to vector<128x4xf32>
    %c1_i32_12 = arith.constant 1 : i32
    %23 = arith.addi %2, %c1_i32_12 : i32
    %c0_13 = arith.constant 0 : index
    %24 = arith.index_cast %23 : i32 to index
    %c1_14 = arith.constant 1 : index
    %c0_15 = arith.constant 0 : index
    %25 = vector.load %arg2[%c0_13, %24, %c1_14, %c0_15] : memref<1x18x18x4xf32, #tpu.memory_space<vmem>>, vector<1x8x16x4xf32>
    %26 = vector.shape_cast %25 : vector<1x8x16x4xf32> to vector<8x16x4xf32>
    %27 = vector.shape_cast %26 : vector<8x16x4xf32> to vector<128x4xf32>
    %c1_i32_16 = arith.constant 1 : i32
    %28 = arith.addi %2, %c1_i32_16 : i32
    %c0_17 = arith.constant 0 : index
    %29 = arith.index_cast %28 : i32 to index
    %c2_18 = arith.constant 2 : index
    %c0_19 = arith.constant 0 : index
    %30 = vector.load %arg2[%c0_17, %29, %c2_18, %c0_19] : memref<1x18x18x4xf32, #tpu.memory_space<vmem>>, vector<1x8x16x4xf32>
    %31 = vector.shape_cast %30 : vector<1x8x16x4xf32> to vector<8x16x4xf32>
    %32 = vector.shape_cast %31 : vector<8x16x4xf32> to vector<128x4xf32>
    %c2_i32 = arith.constant 2 : i32
    %33 = arith.addi %2, %c2_i32 : i32
    %c0_20 = arith.constant 0 : index
    %34 = arith.index_cast %33 : i32 to index
    %c0_21 = arith.constant 0 : index
    %c0_22 = arith.constant 0 : index
    %35 = vector.load %arg2[%c0_20, %34, %c0_21, %c0_22] : memref<1x18x18x4xf32, #tpu.memory_space<vmem>>, vector<1x8x16x4xf32>
    %36 = vector.shape_cast %35 : vector<1x8x16x4xf32> to vector<8x16x4xf32>
    %37 = vector.shape_cast %36 : vector<8x16x4xf32> to vector<128x4xf32>
    %c2_i32_23 = arith.constant 2 : i32
    %38 = arith.addi %2, %c2_i32_23 : i32
    %c0_24 = arith.constant 0 : index
    %39 = arith.index_cast %38 : i32 to index
    %c1_25 = arith.constant 1 : index
    %c0_26 = arith.constant 0 : index
    %40 = vector.load %arg2[%c0_24, %39, %c1_25, %c0_26] : memref<1x18x18x4xf32, #tpu.memory_space<vmem>>, vector<1x8x16x4xf32>
    %41 = vector.shape_cast %40 : vector<1x8x16x4xf32> to vector<8x16x4xf32>
    %42 = vector.shape_cast %41 : vector<8x16x4xf32> to vector<128x4xf32>
    %c2_i32_27 = arith.constant 2 : i32
    %43 = arith.addi %2, %c2_i32_27 : i32
    %c0_28 = arith.constant 0 : index
    %44 = arith.index_cast %43 : i32 to index
    %c2_29 = arith.constant 2 : index
    %c0_30 = arith.constant 0 : index
    %45 = vector.load %arg2[%c0_28, %44, %c2_29, %c0_30] : memref<1x18x18x4xf32, #tpu.memory_space<vmem>>, vector<1x8x16x4xf32>
    %46 = vector.shape_cast %45 : vector<1x8x16x4xf32> to vector<8x16x4xf32>
    %47 = vector.shape_cast %46 : vector<8x16x4xf32> to vector<128x4xf32>
    %48 = tpu.concatenate %7, %12, %17, %22, %27, %32, %37, %42, %47 in 1 : vector<128x4xf32>, vector<128x4xf32>, vector<128x4xf32>, vector<128x4xf32>, vector<128x4xf32>, vector<128x4xf32>, vector<128x4xf32>, vector<128x4xf32>, vector<128x4xf32> -> vector<128x36xf32>
    %c0_31 = arith.constant 0 : index
    %c0_32 = arith.constant 0 : index
    %49 = vector.load %arg3[%c0_31, %c0_32] : memref<8x36xf32, #tpu.memory_space<vmem>>, vector<8x36xf32>
    %cst = arith.constant dense<0.000000e+00> : vector<8x128xf32>
    %50 = tpu.matmul %49, %48, %cst {dimension_numbers = #tpu.dot_dimension_numbers<[1], [1], [0], [0], [0, 0, 1, 0], [], []>} : vector<8x36xf32>, vector<128x36xf32>, vector<8x128xf32> -> vector<8x128xf32>
    %c0_33 = arith.constant 0 : index
    %c0_34 = arith.constant 0 : index
    %51 = vector.load %arg4[%c0_33, %c0_34] : memref<8x1xf32, #tpu.memory_space<vmem>>, vector<8x1xf32>
    %52 = vector.broadcast %51 : vector<8x1xf32> to vector<8x128xf32>
    %53 = arith.addf %50, %52 : vector<8x128xf32>
    %cst_35 = arith.constant 0.000000e+00 : f32
    %54 = vector.broadcast %cst_35 : f32 to vector<8x128xf32>
    %55 = arith.maximumf %53, %54 : vector<8x128xf32>
    %c0_36 = arith.constant 0 : index
    %c0_37 = arith.constant 0 : index
    %c0_38 = arith.constant 0 : index
    %56 = vector.load %arg5[%c0_36, %c0_37, %c0_38] : memref<1x8x128xf32, #tpu.memory_space<vmem>>, vector<1x8x128xf32>
    %57 = vector.shape_cast %56 : vector<1x8x128xf32> to vector<8x128xf32>
    %58 = vector.shape_cast %55 : vector<8x128xf32> to vector<1x8x128xf32>
    tpu.vector_store %arg5[%c0_36, %c0_37, %c0_38], %58 {strides = array<i32>} : memref<1x8x128xf32, #tpu.memory_space<vmem>>, vector<1x8x128xf32>,
    return
  }
  func.func @transform_0(%arg0: i32, %arg1: i32) -> (i32, i32, i32, i32) {
    %c0_i32 = arith.constant 0 : i32
    %c0_i32_0 = arith.constant 0 : i32
    %c0_i32_1 = arith.constant 0 : i32
    %c0_i32_2 = arith.constant 0 : i32
    return %arg0, %c0_i32, %c0_i32_0, %c0_i32_1 : i32, i32, i32, i32
  }
  func.func @transform_1(%arg0: i32, %arg1: i32) -> (i32, i32) {
    %c0_i32 = arith.constant 0 : i32
    %c0_i32_0 = arith.constant 0 : i32
    %c0_i32_1 = arith.constant 0 : i32
    return %c0_i32, %c0_i32_0 : i32, i32
  }
  func.func @transform_2(%arg0: i32, %arg1: i32) -> (i32, i32) {
    %c0_i32 = arith.constant 0 : i32
    %c0_i32_0 = arith.constant 0 : i32
    %c0_i32_1 = arith.constant 0 : i32
    return %c0_i32, %c0_i32_0 : i32, i32
  }
  func.func @transform_3(%arg0: i32, %arg1: i32) -> (i32, i32, i32) {
    %c0_i32 = arith.constant 0 : i32
    %c0_i32_0 = arith.constant 0 : i32
    return %arg0, %c0_i32, %arg1 : i32, i32, i32
  }
}

</mosaic_0001>

<bundles_post_ra>
// kernel: tpu_custom_call.1
= control target key start
LH: loop header
LB: loop body
LE: loop exit
PB: predicated region body
PF: predicated region fallthrough
CT: control target
= control target key end

     0   :  { %8 = vsyncpa [#allocation3], 0  ;;  %s2291_s0 = inlined_call_operand.vmem [shape: f32[2,18,18,4], index: 0, kind: input, shape index: {}]   ;;  %s2292_s1 = inlined_call_operand.vmem [shape: f32[8,36], index: 1, kind: input, shape index: {}]   ;;  %s2293_s2 = inlined_call_operand.vmem [shape: f32[8,1], index: 2, kind: input, shape index: {}]   ;;  %s2294_s3 = inlined_call_operand.hbm [shape: f32[2,8,256], index: 3, kind: output, shape index: {}]  }
   0x1   :  { %10 = vsyncpa [#allocation3 + $0x1], 0  ;;  %s1606_s12 = smov 0   ;;  %s1608_s13 = smov 0  }
   0x2   :  { %s1610_s14 = smov 0   ;;  %s1612_s15 = smov 0  }
   0x3   :  { %s1614_s16 = smov 0   ;;  %s1616_s17 = smov 0  }
   0x4   :  { %s1618_s18 = smov 0   ;;  %s1620_s19 = smov 0  }
   0x5 LB: > { %s1213_s20 = sadd.s32 4294967295, %s1572_s19   ;;  %s1214_s21 = sadd.s32 4294967294, %s1572_s19   ;;  %s1572_s19 = sphi %s1620_s19, %s16_s19   ;;  %s1568_s18 = sphi %s1618_s18, %s2303_s18   ;;  %s1564_s17 = sphi %s1616_s17, %s2302_s17   ;;  %s1560_s16 = sphi %s1614_s16, %s2301_s16   ;;  %s1556_s15 = sphi %s1612_s15, %s2300_s15   ;;  %s1552_s14 = sphi %s1610_s14, %s2299_s14   ;;  %s1548_s13 = sphi %s1608_s13, %s2298_s13   ;;  %s1544_s12 = sphi %s1606_s12, %s2297_s12  }
   0x6   : > { %s25_s22 = sadd.s32 1, %s1564_s17  ;;  %s28_s23 = sadd.s32 1, %s1568_s18 }
   0x7   : > { %p26_p0 = scmp.ge.s32.totalorder %s25_s22, 2  ;;  %p115_p1 = scmp.ne.s32.totalorder %s1552_s14, %s1548_s13 }
   0x8   : > { %p116_p2 = scmp.eq.s32.totalorder %s1213_s20, 3  ;;  %p121_p5 = scmp.ne.s32.totalorder %s1548_s13, %s1544_s12 }
   0x9   : > { %s2305_s22 = smov (%p26_p0, %s25_s22), 0  ;;  %s2307_s23 = smov (!%p26_p0, %s28_s23), %s1568_s18 }
   0xa   : > { %s101_s24 = ssub.s32 %s1564_s17, %s2305_s22  ;;  %p1657_p3 = por %p116_p2, %p115_p1 }
   0xb   : > { %p30_p4 = scmp.ge.s32.totalorder %s2307_s23, 2  ;;  %p122_p6 = scmp.eq.s32.totalorder %s1214_s21, 3 }
   0xc   : > { %p1217_p7 = scmp.ge.s32.totalorder %s1572_s19, 1  ;;  %p154_p9 = scmp.lt.s32.totalorder %s1572_s19, 5 }
   0xd   : > { %s2309_s23 = smov (%p30_p4, %s2307_s23), 0  ;;  %p1666_p8 = por %p122_p6, %p121_p5 }
   0xe   : > { %s100_s27 = ssub.s32 %s1568_s18, %s2309_s23  ;;  %s105_s28 = sadd.s32 1, %s1552_s14 }
   0xf   : > { %s102_s29 = sor.u32 %s101_s24, %s100_s27  ;;  %p155_p10 = pnand %p1217_p7, %p154_p9 }
  0x10   : > { %p103_p11 = scmp.eq.s32.totalorder %s102_s29, 0  ;;  %p178_p12 = scmp.lt.s32.totalorder (!%p155_p10), %s1560_s16, 1 }
  0x11   : > { %158 = sbr.rel (%p155_p10) target bundleno = 611 (0x263), region = 32  ;;  %s1574_s11 = smov (!%p155_p10), 12  }
  0x12   : > { %s1675_s30 = scalar_select %p103_p11, %s1552_s14, %s105_s28  }
  0x13   : > { %s1221_s5 = smul.u32 (!%p155_p10), 192, %s1556_s15  ;;  %s1575_s20 = smov (!%p155_p10), 4  }
  0x14   : > { %s1576_s21 = smov (!%p155_p10), 16   ;;  %s1577_s24 = smov (!%p155_p10), 8  }
  0x15   : > { %s1579_s27 = smov (!%p155_p10), 20   ;;  %s1580_s28 = smov (!%p155_p10), 24  }
  0x16   : > { %s179_s4 = scalar_select %p178_p12, %s1560_s16, 1  ;;  %v1578_v6 = vmov 0.0   ;;  %vm848_vm0 = vcmask 31744   ;;  %vm865_vm1 = vcmask 64512   ;;  %vm882_vm2 = vcmask 97280  }
  0x17   : > { %1361 = vmatprep.subr.mxu0 %v1578_v6  ;;  %s1581_s29 = smov 28   ;;  %vm899_vm3 = vcmask 130048   ;;  %vm916_vm4 = vcmask 162816   ;;  %vm933_vm5 = vcmask 195584   ;;  %vm950_vm6 = vcmask 228352  }
  0x18   : > { %s1396_s6 = smul.u32 432, %s179_s4  ;;  %s1582_s4 = smov 32   ;;  %vm967_vm7 = vcmask 261120   ;;  %vm991_vm8 = vcmask 293888   ;;  %vm1583_vm9 = vmmov 0  }
  0x19   : > { %1393 = vmatprep.mubr.msk.f32.mxu0 %vm1583_vm9, %v1578_v6 }
  0x1a   : > { %s182_s9 = scalar_lea.vmem %s2291_s0, %s1396_s6 }
  0x1b   : > { %s1683_s10 = scalar_lea.vmem %s182_s9, %s1221_s5  ;;  %s175_s9 = sand.u32 1, %s1548_s13  }
  0x1c   : > { %v1239_v0 = vld [vmem:[%s1683_s10 + $0xc8] sm:$0xff]  ;;  %v1687_v1 = vld [vmem:[%s1683_s10 + $0xb1] sm:$0xff]  ;;  %v1289_v7 = vld [vmem:[%s1683_s10 + $0xe0] sm:$0xff]  ;;  %s1116_s5 = scalar_lea.sflag [#allocation3], %s175_s9 }
  0x1d   : > { %510 = vrot.lane.b32.xlu1 %v1239_v0, %s1574_s11  ;;  %382 = vrot.lane.b32.xlu0 %v1687_v1, %s1575_s20  ;;  %v1255_v2 = vld [vmem:[%s1683_s10 + $0xc9] sm:$0xff]  ;;  %v1694_v3 = vld [vmem:[%s1683_s10 + $0xb2] sm:$0xff] }
  0x1e   : > { %v1271_v4 = vld [vmem:[%s1683_s10 + $0xca] sm:$0xff]  ;;  %v1305_v9 = vld [vmem:[%s1683_s10 + $0xe1] sm:$0xff]  ;;  %v1724_v14 = vld [vmem:[%s1683_s10 + $0x99] sm:$0xff] }
  0x1f   : > { %v1701_v5 = vld [vmem:[%s1683_s10 + $0xa9] sm:$0xff]  ;;  %v1238_v10 = vld [vmem:[%s1683_s10 + $0xc0] sm:$0xff]  ;;  %v1288_v15 = vld [vmem:[%s1683_s10 + $0xd8] sm:$0xff] }
  0x20   : > { %v1709_v8 = vld [vmem:[%s1683_s10 + $0xaa] sm:$0xff]  ;;  %v1321_v11 = vld [vmem:[%s1683_s10 + $0xe2] sm:$0xff]  ;;  %v1731_v16 = vld [vmem:[%s1683_s10 + $0x9a] sm:$0xff] }
  0x21   : > { %574 = vrot.lane.b32.xlu1 %v1255_v2, %s1576_s21  ;;  %446 = vrot.lane.b32.xlu0 %v1694_v3, %s1577_s24  ;;  %v1254_v12 = vld [vmem:[%s1683_s10 + $0xc1] sm:$0xff]  ;;  %v1304_v17 = vld [vmem:[%s1683_s10 + $0xd9] sm:$0xff] }
  0x22   : > { %v1270_v13 = vld [vmem:[%s1683_s10 + $0xc2] sm:$0xff]  ;;  %v1738_v18 = vld [vmem:[%s1683_s10 + $0xb0] sm:$0xff]  ;;  %v1320_v19 = vld [vmem:[%s1683_s10 + $0xda] sm:$0xff] }
  0x23   : > { %v1748_v20 = vld [vmem:[%s1683_s10 + $0x91] sm:$0xff]  ;;  %v1761_v22 = vld [vmem:[%s1683_s10 + $0xa8] sm:$0xff]  ;;  %v1792_v26 = vld [vmem:[%s1683_s10 + $0x79] sm:$0xff] }
  0x24   : > { %v1755_v21 = vld [vmem:[%s1683_s10 + $0x92] sm:$0xff]  ;;  %v1770_v23 = vld [vmem:[%s1683_s10 + $0x81] sm:$0xff]  ;;  %v1817_v29 = vld [vmem:[%s1683_s10 + $0x69] sm:$0xff] }
  0x25   : > { %638 = vrot.lane.b32.xlu1 %v1271_v4, %s1579_s27  ;;  %380 = vrot.lane.b32.xlu0 %v1701_v5, %s1575_s20  ;;  %v1777_v24 = vld [vmem:[%s1683_s10 + $0x82] sm:$0xff]  ;;  %v1783_v25 = vld [vmem:[%s1683_s10 + $0x98] sm:$0xff] }
  0x26   : > { %v1799_v27 = vld [vmem:[%s1683_s10 + $0x7a] sm:$0xff]  ;;  %v1806_v28 = vld [vmem:[%s1683_s10 + $0x90] sm:$0xff]  ;;  %v1849_v33 = vld [vmem:[%s1683_s10 + $0x62] sm:$0xff] }
  0x27   : > { %v1824_v30 = vld [vmem:[%s1683_s10 + $0x6a] sm:$0xff]  ;;  %v1831_v31 = vld [vmem:[%s1683_s10 + $0x80] sm:$0xff]  ;;  %v1856_v34 = vld [vmem:[%s1683_s10 + $0x78] sm:$0xff] }
  0x28   : > { %v1842_v32 = vld [vmem:[%s1683_s10 + $0x61] sm:$0xff]  ;;  %v1867_v37 = vld [vmem:[%s1683_s10 + $0x51] sm:$0xff]  ;;  %v1899_v54 = vld [vmem:[%s1683_s10 + $0x49] sm:$0xff] }
  0x29   : > { %702 = vrot.lane.b32.xlu1 %v1289_v7, %s1580_s28  ;;  %444 = vrot.lane.b32.xlu0 %v1709_v8, %s1577_s24  ;;  %v1874_v40 = vld [vmem:[%s1683_s10 + $0x52] sm:$0xff]  ;;  %v1884_v45 = vld [vmem:[%s1683_s10 + $0x68] sm:$0xff] }
  0x2a   : > { %v1909_v59 = vld [vmem:[%s1683_s10 + $0x4a] sm:$0xff]  ;;  %v1917_v62 = vld [vmem:[%s1683_s10 + $0x60] sm:$0xff] }
  0x2d   : > { %766 = vrot.lane.b32.xlu1 %v1305_v9, %s1581_s29  ;;  %508 = vrot.lane.b32.xlu0 %v1238_v10, %s1574_s11 }
  0x31   : > { %830 = vrot.lane.b32.xlu1 %v1321_v11, %s1582_s4  ;;  %572 = vrot.lane.b32.xlu0 %v1254_v12, %s1576_s21 }
  0x35   : > { %636 = vrot.lane.b32.xlu1 %v1270_v13, %s1579_s27  ;;  %378 = vrot.lane.b32.xlu0 %v1724_v14, %s1575_s20 }
  0x39   : > { %700 = vrot.lane.b32.xlu1 %v1288_v15, %s1580_s28  ;;  %442 = vrot.lane.b32.xlu0 %v1731_v16, %s1577_s24  ;;  %v1945_v15 = vld [vmem:[%s1683_s10 + $0x3a] sm:$0xff] }
  0x3d   : > { %764 = vrot.lane.b32.xlu1 %v1304_v17, %s1581_s29  ;;  %506 = vrot.lane.b32.xlu0 %v1738_v18, %s1574_s11 }
  0x41   : > { %828 = vrot.lane.b32.xlu1 %v1320_v19, %s1582_s4  ;;  %570 = vrot.lane.b32.xlu0 %v1687_v1, %s1576_s21 }
  0x45   : > { %634 = vrot.lane.b32.xlu1 %v1694_v3, %s1579_s27  ;;  %376 = vrot.lane.b32.xlu0 %v1748_v20, %s1575_s20 }
  0x49   : > { %698 = vrot.lane.b32.xlu1 %v1239_v0, %s1580_s28  ;;  %440 = vrot.lane.b32.xlu0 %v1755_v21, %s1577_s24 }
  0x4d   : > { %762 = vrot.lane.b32.xlu1 %v1255_v2, %s1581_s29  ;;  %504 = vrot.lane.b32.xlu0 %v1761_v22, %s1574_s11 }
  0x51   : > { %826 = vrot.lane.b32.xlu1 %v1271_v4, %s1582_s4  ;;  %568 = vrot.lane.b32.xlu0 %v1701_v5, %s1576_s21 }
  0x55   : > { %632 = vrot.lane.b32.xlu1 %v1709_v8, %s1579_s27  ;;  %374 = vrot.lane.b32.xlu0 %v1770_v23, %s1575_s20 }
  0x59   : > { %696 = vrot.lane.b32.xlu1 %v1238_v10, %s1580_s28  ;;  %438 = vrot.lane.b32.xlu0 %v1777_v24, %s1577_s24  ;;  %v1935_v10 = vld [vmem:[%s1683_s10 + $0x39] sm:$0xff] }
  0x5d   : > { %760 = vrot.lane.b32.xlu1 %v1254_v12, %s1581_s29  ;;  %502 = vrot.lane.b32.xlu0 %v1783_v25, %s1574_s11 }
  0x61   : > { %824 = vrot.lane.b32.xlu1 %v1270_v13, %s1582_s4  ;;  %566 = vrot.lane.b32.xlu0 %v1724_v14, %s1576_s21 }
  0x65   : > { %630 = vrot.lane.b32.xlu1 %v1731_v16, %s1579_s27  ;;  %372 = vrot.lane.b32.xlu0 %v1792_v26, %s1575_s20 }
  0x69   : > { %694 = vrot.lane.b32.xlu1 %v1738_v18, %s1580_s28  ;;  %436 = vrot.lane.b32.xlu0 %v1799_v27, %s1577_s24 }
  0x6d   : > { %758 = vrot.lane.b32.xlu1 %v1687_v1, %s1581_s29  ;;  %500 = vrot.lane.b32.xlu0 %v1806_v28, %s1574_s11 }
  0x71   : > { %822 = vrot.lane.b32.xlu1 %v1694_v3, %s1582_s4  ;;  %564 = vrot.lane.b32.xlu0 %v1748_v20, %s1576_s21 }
  0x75   : > { %628 = vrot.lane.b32.xlu1 %v1755_v21, %s1579_s27  ;;  %370 = vrot.lane.b32.xlu0 %v1817_v29, %s1575_s20 }
  0x79   : > { %692 = vrot.lane.b32.xlu1 %v1761_v22, %s1580_s28  ;;  %434 = vrot.lane.b32.xlu0 %v1824_v30, %s1577_s24 }
  0x7d   : > { %756 = vrot.lane.b32.xlu1 %v1701_v5, %s1581_s29  ;;  %498 = vrot.lane.b32.xlu0 %v1831_v31, %s1574_s11 }
  0x81   : > { %820 = vrot.lane.b32.xlu1 %v1709_v8, %s1582_s4  ;;  %562 = vrot.lane.b32.xlu0 %v1770_v23, %s1576_s21 }
  0x85   : > { %626 = vrot.lane.b32.xlu1 %v1777_v24, %s1579_s27  ;;  %368 = vrot.lane.b32.xlu0 %v1842_v32, %s1575_s20 }
  0x89   : > { %690 = vrot.lane.b32.xlu1 %v1783_v25, %s1580_s28  ;;  %432 = vrot.lane.b32.xlu0 %v1849_v33, %s1577_s24 }
  0x8d   : > { %754 = vrot.lane.b32.xlu1 %v1724_v14, %s1581_s29  ;;  %496 = vrot.lane.b32.xlu0 %v1856_v34, %s1574_s11 }
  0x8f   : > { %v511_v35 = vpop.permute.xlu1 %510  ;;  %v383_v36 = vpop.permute.xlu0 %382 }
  0x90   : > { %v864_v41 = vsel %vm848_vm0, %v1738_v18, %v383_v36  ;;  %v1953_v18 = vld [vmem:[%s1683_s10 + $0x50] sm:$0xff] }
  0x91   : > { %818 = vrot.lane.b32.xlu1 %v1731_v16, %s1582_s4  ;;  %560 = vrot.lane.b32.xlu0 %v1792_v26, %s1576_s21 }
  0x93   : > { %v575_v38 = vpop.permute.xlu1 %574  ;;  %v447_v39 = vpop.permute.xlu0 %446 }
  0x94   : > { %v881_v44 = vsel %vm865_vm1, %v864_v41, %v447_v39 }
  0x95   : > { %624 = vrot.lane.b32.xlu1 %v1799_v27, %s1579_s27  ;;  %366 = vrot.lane.b32.xlu0 %v1867_v37, %s1575_s20  ;;  %v898_v46 = vsel %vm882_vm2, %v881_v44, %v511_v35 }
  0x96   : > { %v915_v49 = vsel %vm899_vm3, %v898_v46, %v575_v38 }
  0x97   : > { %v639_v42 = vpop.permute.xlu1 %638  ;;  %v381_v43 = vpop.permute.xlu0 %380 }
  0x98   : > { %v932_v52 = vsel %vm916_vm4, %v915_v49, %v639_v42  ;;  %v863_v1 = vsel %vm848_vm0, %v1761_v22, %v381_v43 }
  0x99   : > { %688 = vrot.lane.b32.xlu1 %v1806_v28, %s1580_s28  ;;  %430 = vrot.lane.b32.xlu0 %v1874_v40, %s1577_s24 }
  0x9b   : > { %v703_v47 = vpop.permute.xlu1 %702  ;;  %v445_v48 = vpop.permute.xlu0 %444 }
  0x9c   : > { %v949_v53 = vsel %vm933_vm5, %v932_v52, %v703_v47  ;;  %v880_v2 = vsel %vm865_vm1, %v863_v1, %v445_v48  ;;  %v1989_v47 = vld [vmem:[%s1683_s10 + $0x48] sm:$0xff] }
  0x9d   : > { %752 = vrot.lane.b32.xlu1 %v1748_v20, %s1581_s29  ;;  %494 = vrot.lane.b32.xlu0 %v1884_v45, %s1574_s11 }
  0x9f   : > { %v767_v50 = vpop.permute.xlu1 %766  ;;  %v509_v51 = vpop.permute.xlu0 %508 }
  0xa0   : > { %v966_v55 = vsel %vm950_vm6, %v949_v53, %v767_v50  ;;  %v897_v3 = vsel %vm882_vm2, %v880_v2, %v509_v51  ;;  %v2025_v2 = vld [vmem:[%s1683_s10 + $0x38] sm:$0xff] }
  0xa1   : > { %816 = vrot.lane.b32.xlu1 %v1755_v21, %s1582_s4  ;;  %558 = vrot.lane.b32.xlu0 %v1817_v29, %s1576_s21 }
  0xa3   : > { %v831_v56 = vpop.permute.xlu1 %830  ;;  %v573_v57 = vpop.permute.xlu0 %572 }
  0xa4   : > { %v983_v58 = vsel %vm967_vm7, %v966_v55, %v831_v56  ;;  %v914_v7 = vsel %vm899_vm3, %v897_v3, %v573_v57 }
  0xa5   : > { %622 = vrot.lane.b32.xlu1 %v1824_v30, %s1579_s27  ;;  %364 = vrot.lane.b32.xlu0 %v1899_v54, %s1575_s20 }
  0xa6   : > { %1362 = vmatpush3.xpose.msk.msra.mxu0 %vm991_vm8, %v983_v58 }
  0xa7   : > { %v637_v60 = vpop.permute.xlu1 %636  ;;  %v379_v61 = vpop.permute.xlu0 %378  ;;  %1363 = vmatprep.subr.mxu0 %v1578_v6 }
  0xa8   : > { %v931_v8 = vsel %vm916_vm4, %v914_v7, %v637_v60  ;;  %v862_v21 = vsel %vm848_vm0, %v1783_v25, %v379_v61 }
  0xa9   : > { %686 = vrot.lane.b32.xlu1 %v1831_v31, %s1580_s28  ;;  %428 = vrot.lane.b32.xlu0 %v1909_v59, %s1577_s24 }
  0xab   : > { %v701_v63 = vpop.permute.xlu1 %700  ;;  %v443_v0 = vpop.permute.xlu0 %442 }
  0xac   : > { %v948_v9 = vsel %vm933_vm5, %v931_v8, %v701_v63  ;;  %v879_v22 = vsel %vm865_vm1, %v862_v21, %v443_v0 }
  0xad   : > { %750 = vrot.lane.b32.xlu1 %v1770_v23, %s1581_s29  ;;  %492 = vrot.lane.b32.xlu0 %v1917_v62, %s1574_s11 }
  0xaf   : > { %v765_v4 = vpop.permute.xlu1 %764  ;;  %v507_v5 = vpop.permute.xlu0 %506 }
  0xb0   : > { %v965_v11 = vsel %vm950_vm6, %v948_v9, %v765_v4  ;;  %v896_v23 = vsel %vm882_vm2, %v879_v22, %v507_v5  ;;  %v2061_v22 = vld [vmem:[%s1683_s10 + $0x30] sm:$0xff] }
  0xb1   : > { %814 = vrot.lane.b32.xlu1 %v1777_v24, %s1582_s4  ;;  %556 = vrot.lane.b32.xlu0 %v1842_v32, %s1576_s21 }
  0xb3   : > { %v829_v12 = vpop.permute.xlu1 %828  ;;  %v571_v13 = vpop.permute.xlu0 %570 }
  0xb4   : > { %v982_v14 = vsel %vm967_vm7, %v965_v11, %v829_v12  ;;  %v913_v36 = vsel %vm899_vm3, %v896_v23, %v571_v13 }
  0xb5   : > { %620 = vrot.lane.b32.xlu1 %v1849_v33, %s1579_s27  ;;  %362 = vrot.lane.b32.xlu0 %v1935_v10, %s1575_s20 }
  0xb6   : > { %1364 = vmatpush3.xpose.msk.msra.mxu0 %vm991_vm8, %v982_v14 }
  0xb7   : > { %v635_v16 = vpop.permute.xlu1 %634  ;;  %v377_v17 = vpop.permute.xlu0 %376  ;;  %1365 = vmatprep.subr.mxu0 %v1578_v6 }
  0xb8   : > { %v930_v38 = vsel %vm916_vm4, %v913_v36, %v635_v16  ;;  %v861_v50 = vsel %vm848_vm0, %v1806_v28, %v377_v17 }
  0xb9   : > { %684 = vrot.lane.b32.xlu1 %v1856_v34, %s1580_s28  ;;  %426 = vrot.lane.b32.xlu0 %v1945_v15, %s1577_s24 }
  0xbb   : > { %v699_v19 = vpop.permute.xlu1 %698  ;;  %v441_v20 = vpop.permute.xlu0 %440 }
  0xbc   : > { %v947_v25 = vsel %vm933_vm5, %v930_v38, %v699_v19  ;;  %v878_v51 = vsel %vm865_vm1, %v861_v50, %v441_v20 }
  0xbd   : > { %748 = vrot.lane.b32.xlu1 %v1792_v26, %s1581_s29  ;;  %490 = vrot.lane.b32.xlu0 %v1953_v18, %s1574_s11  ;;  %v1971_v26 = vld [vmem:[%s1683_s10 + $0x31] sm:$0xff] }
  0xbf   : > { %v763_v24 = vpop.permute.xlu1 %762  ;;  %v505_v35 = vpop.permute.xlu0 %504 }
  0xc0   : > { %v964_v39 = vsel %vm950_vm6, %v947_v25, %v763_v24  ;;  %v895_v52 = vsel %vm882_vm2, %v878_v51, %v505_v35  ;;  %v2091_v51 = vld [vmem:[%s1683_s10 + $0x20] sm:$0xff] }
  0xc1   : > { %812 = vrot.lane.b32.xlu1 %v1799_v27, %s1582_s4  ;;  %554 = vrot.lane.b32.xlu0 %v1867_v37, %s1576_s21  ;;  %v1981_v27 = vld [vmem:[%s1683_s10 + $0x32] sm:$0xff] }
  0xc3   : > { %v827_v41 = vpop.permute.xlu1 %826  ;;  %v569_v42 = vpop.permute.xlu0 %568 }
  0xc4   : > { %v981_v43 = vsel %vm967_vm7, %v964_v39, %v827_v41  ;;  %v912_v56 = vsel %vm899_vm3, %v895_v52, %v569_v42 }
  0xc5   : > { %618 = vrot.lane.b32.xlu1 %v1874_v40, %s1579_s27  ;;  %360 = vrot.lane.b32.xlu0 %v1971_v26, %s1575_s20 }
  0xc6   : > { %1366 = vmatpush3.xpose.msk.msra.mxu0 %vm991_vm8, %v981_v43 }
  0xc7   : > { %v633_v44 = vpop.permute.xlu1 %632  ;;  %v375_v46 = vpop.permute.xlu0 %374  ;;  %1367 = vmatprep.subr.mxu0 %v1578_v6 }
  0xc8   : > { %v929_v57 = vsel %vm916_vm4, %v912_v56, %v633_v44  ;;  %v860_v5 = vsel %vm848_vm0, %v1831_v31, %v375_v46 }
  0xc9   : > { %682 = vrot.lane.b32.xlu1 %v1884_v45, %s1580_s28  ;;  %424 = vrot.lane.b32.xlu0 %v1981_v27, %s1577_s24 }
  0xcb   : > { %v697_v48 = vpop.permute.xlu1 %696  ;;  %v439_v49 = vpop.permute.xlu0 %438 }
  0xcc   : > { %v946_v28 = vsel %vm933_vm5, %v929_v57, %v697_v48  ;;  %v877_v7 = vsel %vm865_vm1, %v860_v5, %v439_v49  ;;  %v2121_v5 = vld [vmem:[%s1683_s10 + $0x18] sm:$0xff] }
  0xcd   : > { %746 = vrot.lane.b32.xlu1 %v1817_v29, %s1581_s29  ;;  %488 = vrot.lane.b32.xlu0 %v1989_v47, %s1574_s11  ;;  %v2007_v29 = vld [vmem:[%s1683_s10 + $0x21] sm:$0xff] }
  0xcf   : > { %v761_v53 = vpop.permute.xlu1 %760  ;;  %v503_v55 = vpop.permute.xlu0 %502 }
  0xd0   : > { %v963_v58 = vsel %vm950_vm6, %v946_v28, %v761_v53  ;;  %v894_v8 = vsel %vm882_vm2, %v877_v7, %v503_v55 }
  0xd1   : > { %810 = vrot.lane.b32.xlu1 %v1824_v30, %s1582_s4  ;;  %552 = vrot.lane.b32.xlu0 %v1899_v54, %s1576_s21  ;;  %v2017_v30 = vld [vmem:[%s1683_s10 + $0x22] sm:$0xff] }
  0xd3   : > { %v825_v60 = vpop.permute.xlu1 %824  ;;  %v567_v61 = vpop.permute.xlu0 %566 }
  0xd4   : > { %v980_v63 = vsel %vm967_vm7, %v963_v58, %v825_v60  ;;  %v911_v12 = vsel %vm899_vm3, %v894_v8, %v567_v61 }
  0xd5   : > { %616 = vrot.lane.b32.xlu1 %v1909_v59, %s1579_s27  ;;  %358 = vrot.lane.b32.xlu0 %v2007_v29, %s1575_s20 }
  0xd6   : > { %1368 = vmatpush3.xpose.msk.msra.mxu0 %vm991_vm8, %v980_v63 }
  0xd7   : > { %v631_v0 = vpop.permute.xlu1 %630  ;;  %v373_v1 = vpop.permute.xlu0 %372  ;;  %1369 = vmatprep.subr.mxu0 %v1578_v6 }
  0xd8   : > { %v928_v13 = vsel %vm916_vm4, %v911_v12, %v631_v0  ;;  %v859_v35 = vsel %vm848_vm0, %v1856_v34, %v373_v1 }
  0xd9   : > { %680 = vrot.lane.b32.xlu1 %v1917_v62, %s1580_s28  ;;  %422 = vrot.lane.b32.xlu0 %v2017_v30, %s1577_s24 }
  0xdb   : > { %v695_v3 = vpop.permute.xlu1 %694  ;;  %v437_v4 = vpop.permute.xlu0 %436 }
  0xdc   : > { %v945_v31 = vsel %vm933_vm5, %v928_v13, %v695_v3  ;;  %v876_v36 = vsel %vm865_vm1, %v859_v35, %v437_v4 }
  0xdd   : > { %744 = vrot.lane.b32.xlu1 %v1842_v32, %s1581_s29  ;;  %486 = vrot.lane.b32.xlu0 %v2025_v2, %s1574_s11  ;;  %v2043_v32 = vld [vmem:[%s1683_s10 + $0x19] sm:$0xff] }
  0xdf   : > { %v759_v9 = vpop.permute.xlu1 %758  ;;  %v501_v11 = vpop.permute.xlu0 %500 }
  0xe0   : > { %v962_v14 = vsel %vm950_vm6, %v945_v31, %v759_v9  ;;  %v893_v38 = vsel %vm882_vm2, %v876_v36, %v501_v11 }
  0xe1   : > { %808 = vrot.lane.b32.xlu1 %v1849_v33, %s1582_s4  ;;  %550 = vrot.lane.b32.xlu0 %v1935_v10, %s1576_s21  ;;  %v2053_v33 = vld [vmem:[%s1683_s10 + $0x1a] sm:$0xff] }
  0xe3   : > { %v823_v16 = vpop.permute.xlu1 %822  ;;  %v565_v17 = vpop.permute.xlu0 %564 }
  0xe4   : > { %v979_v19 = vsel %vm967_vm7, %v962_v14, %v823_v16  ;;  %v910_v41 = vsel %vm899_vm3, %v893_v38, %v565_v17 }
  0xe5   : > { %614 = vrot.lane.b32.xlu1 %v1945_v15, %s1579_s27  ;;  %356 = vrot.lane.b32.xlu0 %v2043_v32, %s1575_s20 }
  0xe6   : > { %1370 = vmatpush3.xpose.msk.msra.mxu0 %vm991_vm8, %v979_v19 }
  0xe7   : > { %v629_v20 = vpop.permute.xlu1 %628  ;;  %v371_v21 = vpop.permute.xlu0 %370  ;;  %1371 = vmatprep.subr.mxu0 %v1578_v6 }
  0xe8   : > { %v927_v42 = vsel %vm916_vm4, %v910_v41, %v629_v20  ;;  %v858_v55 = vsel %vm848_vm0, %v1884_v45, %v371_v21  ;;  %v985_v21 = vld [vmem:[%s2293_s2] sm:$0xff] }
  0xe9   : > { %678 = vrot.lane.b32.xlu1 %v1953_v18, %s1580_s28  ;;  %420 = vrot.lane.b32.xlu0 %v2053_v33, %s1577_s24 }
  0xeb   : > { %v693_v23 = vpop.permute.xlu1 %692  ;;  %v435_v24 = vpop.permute.xlu0 %434 }
  0xec   : > { %v944_v34 = vsel %vm933_vm5, %v927_v42, %v693_v23  ;;  %v875_v56 = vsel %vm865_vm1, %v858_v55, %v435_v24 }
  0xed   : > { %742 = vrot.lane.b32.xlu1 %v1867_v37, %s1581_s29  ;;  %484 = vrot.lane.b32.xlu0 %v2061_v22, %s1574_s11  ;;  %v203_v37 = vld [vmem:[%s1683_s10 + $0x9] sm:$0xff] }
  0xef   : > { %v757_v25 = vpop.permute.xlu1 %756  ;;  %v499_v39 = vpop.permute.xlu0 %498 }
  0xf0   : > { %v961_v43 = vsel %vm950_vm6, %v944_v34, %v757_v25  ;;  %v892_v57 = vsel %vm882_vm2, %v875_v56, %v499_v39 }
  0xf1   : > { %806 = vrot.lane.b32.xlu1 %v1874_v40, %s1582_s4  ;;  %548 = vrot.lane.b32.xlu0 %v1971_v26, %s1576_s21  ;;  %v219_v40 = vld [vmem:[%s1683_s10 + $0xa] sm:$0xff] }
  0xf3   : > { %v821_v44 = vpop.permute.xlu1 %820  ;;  %v563_v46 = vpop.permute.xlu0 %562 }
  0xf4   : > { %v978_v48 = vsel %vm967_vm7, %v961_v43, %v821_v44  ;;  %v909_v60 = vsel %vm899_vm3, %v892_v57, %v563_v46 }
  0xf5   : > { %612 = vrot.lane.b32.xlu1 %v1981_v27, %s1579_s27  ;;  %354 = vrot.lane.b32.xlu0 %v203_v37, %s1575_s20 }
  0xf6   : > { %1372 = vmatpush3.xpose.msk.msra.mxu0 %vm991_vm8, %v978_v48 }
  0xf7   : > { %v627_v49 = vpop.permute.xlu1 %626  ;;  %v369_v50 = vpop.permute.xlu0 %368  ;;  %1373 = vmatprep.subr.mxu0 %v1578_v6 }
  0xf8   : > { %v926_v61 = vsel %vm916_vm4, %v909_v60, %v627_v49 }
  0xf9   : > { %676 = vrot.lane.b32.xlu1 %v1989_v47, %s1580_s28  ;;  %418 = vrot.lane.b32.xlu0 %v219_v40, %s1577_s24 }
  0xfb   : > { %v691_v52 = vpop.permute.xlu1 %690  ;;  %v433_v53 = vpop.permute.xlu0 %432 }
  0xfc   : > { %v943_v45 = vsel %vm933_vm5, %v926_v61, %v691_v52 }
  0xfd   : > { %740 = vrot.lane.b32.xlu1 %v1899_v54, %s1581_s29  ;;  %482 = vrot.lane.b32.xlu0 %v2091_v51, %s1574_s11  ;;  %v202_v54 = vld [vmem:[%s1683_s10 + $0x1] sm:$0xff] }
  0xff   : > { %v755_v28 = vpop.permute.xlu1 %754  ;;  %v497_v58 = vpop.permute.xlu0 %496 }
 0x100   : > { %v960_v63 = vsel %vm950_vm6, %v943_v45, %v755_v28 }
 0x101   : > { %804 = vrot.lane.b32.xlu1 %v1909_v59, %s1582_s4  ;;  %546 = vrot.lane.b32.xlu0 %v2007_v29, %s1576_s21  ;;  %v218_v59 = vld [vmem:[%s1683_s10 + $0x2] sm:$0xff] }
 0x103   : > { %v819_v0 = vpop.permute.xlu1 %818  ;;  %v561_v1 = vpop.permute.xlu0 %560 }
 0x104   : > { %v977_v3 = vsel %vm967_vm7, %v960_v63, %v819_v0 }
 0x105   : > { %610 = vrot.lane.b32.xlu1 %v2017_v30, %s1579_s27  ;;  %352 = vrot.lane.b32.xlu0 %v202_v54, %s1575_s20  ;;  %v857_v30 = vsel %vm848_vm0, %v1917_v62, %v369_v50 }
 0x106   : > { %1374 = vmatpush3.xpose.msk.msra.mxu0 %vm991_vm8, %v977_v3  ;;  %v874_v9 = vsel %vm865_vm1, %v857_v30, %v433_v53 }
 0x107   : > { %v625_v4 = vpop.permute.xlu1 %624  ;;  %v367_v29 = vpop.permute.xlu0 %366  ;;  %1375 = vmatprep.subr.mxu0 %v1578_v6  ;;  %v891_v11 = vsel %vm882_vm2, %v874_v9, %v497_v58 }
 0x108   : > { %v908_v31 = vsel %vm899_vm3, %v891_v11, %v561_v1  ;;  %v856_v24 = vsel %vm848_vm0, %v1953_v18, %v367_v29 }
 0x109   : > { %674 = vrot.lane.b32.xlu1 %v2025_v2, %s1580_s28  ;;  %416 = vrot.lane.b32.xlu0 %v218_v59, %s1577_s24  ;;  %v925_v14 = vsel %vm916_vm4, %v908_v31, %v625_v4 }
 0x10b   : > { %v689_v7 = vpop.permute.xlu1 %688  ;;  %v431_v8 = vpop.permute.xlu0 %430 }
 0x10c   : > { %v942_v62 = vsel %vm933_vm5, %v925_v14, %v689_v7  ;;  %v873_v35 = vsel %vm865_vm1, %v856_v24, %v431_v8 }
 0x10d   : > { %738 = vrot.lane.b32.xlu1 %v1935_v10, %s1581_s29  ;;  %480 = vrot.lane.b32.xlu0 %v2121_v5, %s1574_s11  ;;  %v1584_v10 = vmov 0   ;;  %s1340_s11 = sshll.u32 %s1560_s16, 1 }
 0x10e   : > { %1479 = vset.pattern.permute.xlu0 %v1584_v10  ;;  %s1127_s20 = sadd.s32 %s1556_s15, %s1340_s11  ;;  %s1585_s15 = smov [#allocation2]  }
 0x10f   : > { %v753_v12 = vpop.permute.xlu1 %752  ;;  %v495_v13 = vpop.permute.xlu0 %494  ;;  %s1484_s16 = sshll.u32 %s1585_s15, 4  ;;  %s1485_s16 = int_to_ptr.vmem [resolvable:$false] %s1484_s16 }
 0x110   : > { %v959_v16 = vsel %vm950_vm6, %v942_v62, %v753_v12  ;;  %v890_v36 = vsel %vm882_vm2, %v873_v35, %v495_v13  ;;  %s1486_s7 = scalar_lea.vmem %s1485_s16, 256 }
 0x111   : > { %802 = vrot.lane.b32.xlu1 %v1945_v15, %s1582_s4  ;;  %544 = vrot.lane.b32.xlu0 %v2043_v32, %s1576_s21  ;;  %s1341_s21 = sshll.u32 %s1127_s20, 7 }
 0x113   : > { %v817_v17 = vpop.permute.xlu1 %816  ;;  %v559_v19 = vpop.permute.xlu0 %558 }
 0x114   : > { %v976_v20 = vsel %vm967_vm7, %v959_v16, %v817_v17 }
 0x115   : > { %608 = vrot.lane.b32.xlu0 %v2053_v33, %s1579_s27  ;;  %1376 = vmatpush3.xpose.msk.msra.mxu0 %vm991_vm8, %v976_v20 }
 0x116   : > { %672 = vrot.lane.b32.xlu1 %v2061_v22, %s1580_s28  ;;  %1377 = vmatprep.subr.mxu0 %v1578_v6 }
 0x117   : > { %v623_v15 = vpop.permute.xlu1 %622  ;;  %v365_v32 = vpop.permute.xlu0 %364 }
 0x118   : > { %v855_v48 = vsel %vm848_vm0, %v1989_v47, %v365_v32 }
 0x119   : > { %736 = vrot.lane.b32.xlu0 %v1971_v26, %s1581_s29  ;;  %v907_v26 = vsel %vm899_vm3, %v890_v36, %v559_v19 }
 0x11a   : > { %800 = vrot.lane.b32.xlu1 %v1981_v27, %s1582_s4  ;;  %v924_v27 = vsel %vm916_vm4, %v907_v26, %v623_v15  ;;  %s1129_s4 = scalar_lea.hbm %s2294_s3, %s1341_s21 }
 0x11b   : > { %v687_v33 = vpop.permute.xlu1 %686  ;;  %v429_v23 = vpop.permute.xlu0 %428 }
 0x11c   : > { %v941_v39 = vsel %vm933_vm5, %v924_v27, %v687_v33  ;;  %v872_v40 = vsel %vm865_vm1, %v855_v48, %v429_v23 }
 0x11d   : > { %988 = vperm.xlu0 %1479, %v985_v21  }
 0x11f   : > { %v751_v38 = vpop.permute.xlu1 %750  ;;  %v493_v25 = vpop.permute.xlu0 %492 }
 0x120   : > { %v958_v41 = vsel %vm950_vm6, %v941_v39, %v751_v38  ;;  %v889_v49 = vsel %vm882_vm2, %v872_v40, %v493_v25 }
 0x123   : > { %v815_v42 = vpop.permute.xlu1 %814  ;;  %v557_v34 = vpop.permute.xlu0 %556 }
 0x124   : > { %v975_v37 = vsel %vm967_vm7, %v958_v41, %v815_v42  ;;  %v906_v53 = vsel %vm899_vm3, %v889_v49, %v557_v34 }
 0x125   : > { %1378 = vmatpush3.xpose.msk.msra.mxu0 %vm991_vm8, %v975_v37 }
 0x126   : > { %1379 = vmatprep.subr.mxu0 %v1578_v6 }
 0x127   : > { %v621_v18 = vpop.permute.xlu1 %620  ;;  %v363_v43 = vpop.permute.xlu0 %362 }
 0x128   : > { %v923_v55 = vsel %vm916_vm4, %v906_v53, %v621_v18  ;;  %v854_v63 = vsel %vm848_vm0, %v2025_v2, %v363_v43 }
 0x12b   : > { %v685_v44 = vpop.permute.xlu1 %684  ;;  %v427_v46 = vpop.permute.xlu0 %426 }
 0x12c   : > { %v940_v56 = vsel %vm933_vm5, %v923_v55, %v685_v44  ;;  %v871_v0 = vsel %vm865_vm1, %v854_v63, %v427_v46 }
 0x12f   : > { %v749_v50 = vpop.permute.xlu1 %748  ;;  %v491_v52 = vpop.permute.xlu0 %490 }
 0x130   : > { %v957_v57 = vsel %vm950_vm6, %v940_v56, %v749_v50  ;;  %v888_v1 = vsel %vm882_vm2, %v871_v0, %v491_v52 }
 0x133   : > { %v813_v28 = vpop.permute.xlu1 %812  ;;  %v555_v58 = vpop.permute.xlu0 %554 }
 0x134   : > { %v974_v60 = vsel %vm967_vm7, %v957_v57, %v813_v28  ;;  %v905_v4 = vsel %vm899_vm3, %v888_v1, %v555_v58 }
 0x135   : > { %1380 = vmatpush3.xpose.msk.msra.mxu0 %vm991_vm8, %v974_v60 }
 0x136   : > { %1381 = vmatprep.subr.mxu0 %v1578_v6 }
 0x137   : > { %v619_v47 = vpop.permute.xlu1 %618  ;;  %v361_v61 = vpop.permute.xlu0 %360 }
 0x138   : > { %v922_v29 = vsel %vm916_vm4, %v905_v4, %v619_v47  ;;  %v853_v14 = vsel %vm848_vm0, %v2061_v22, %v361_v61 }
 0x13b   : > { %v683_v45 = vpop.permute.xlu1 %682  ;;  %v425_v54 = vpop.permute.xlu0 %424 }
 0x13c   : > { %v939_v7 = vsel %vm933_vm5, %v922_v29, %v683_v45  ;;  %v870_v62 = vsel %vm865_vm1, %v853_v14, %v425_v54  ;;  %v187_v54 = vld [vmem:[%s1683_s10 + $0x8] sm:$0xff] }
 0x13f   : > { %v747_v3 = vpop.permute.xlu1 %746  ;;  %v489_v59 = vpop.permute.xlu0 %488 }
 0x140   : > { %v956_v8 = vsel %vm950_vm6, %v939_v7, %v747_v3  ;;  %v887_v10 = vsel %vm882_vm2, %v870_v62, %v489_v59 }
 0x143   : > { %v811_v30 = vpop.permute.xlu1 %810  ;;  %v553_v9 = vpop.permute.xlu0 %552 }
 0x144   : > { %v973_v11 = vsel %vm967_vm7, %v956_v8, %v811_v30  ;;  %v904_v19 = vsel %vm899_vm3, %v887_v10, %v553_v9  ;;  %v186_v30 = vld [vmem:[%s1683_s10] sm:$0xff]  ;;  %s1218_s10 = sshll.u32 %s175_s9, 3 }
 0x145   : > { %1382 = vmatpush3.xpose.msk.msra.mxu0 %vm991_vm8, %v973_v11  ;;  %s177_s24 = scalar_lea.vmem [#allocation2], %s1218_s10 }
 0x146   : > { %1383 = vmatprep.subr.mxu0 %v1578_v6  ;;  %s1131_s27 = sshll.u32 %s177_s24, 4  ;;  %s1132_s27 = int_to_ptr.vmem [resolvable:$true] %s1131_s27 }
 0x147   : > { %v617_v2 = vpop.permute.xlu1 %616  ;;  %v359_v12 = vpop.permute.xlu0 %358  ;;  %s1480_s6 = scalar_lea.vmem %s1132_s27, 128  ;;  %p1487_p2 = scmp.lt.s32.totalorder %s1132_s27, %s1485_s16 }
 0x148   : > { %v921_v20 = vsel %vm916_vm4, %v904_v19, %v617_v2  ;;  %v852_v38 = vsel %vm848_vm0, %v2091_v51, %v359_v12  ;;  %p1481_p13 = scmp.ne.s32.totalorder %s1132_s27, %s1480_s6  ;;  %p1488_p4 = scmp.lt.s32.totalorder %s1486_s7, %s1480_s6 }
 0x14a   : > { %p1482_p0 = pnand %p1481_p13, %p1657_p3  ;;  %p1489_p5 = por %p1488_p4, %p1487_p2 }
 0x14b   : > { %v681_v13 = vpop.permute.xlu1 %680  ;;  %v423_v31 = vpop.permute.xlu0 %422 }
 0x14c   : > { %v938_v15 = vsel %vm933_vm5, %v921_v20, %v681_v13  ;;  %v869_v25 = vsel %vm865_vm1, %v852_v38, %v423_v31  ;;  %p1483_p1 = pneg %p1482_p0 }
 0x14e   : > { %p1490_p6 = pnand %p1489_p5, %p1483_p1 }
 0x14f   : > { %v745_v16 = vpop.permute.xlu1 %744  ;;  %v487_v17 = vpop.permute.xlu0 %486 }
 0x150   : > { %v955_v32 = vsel %vm950_vm6, %v938_v15, %v745_v16  ;;  %v886_v26 = vsel %vm882_vm2, %v869_v25, %v487_v17 }
 0x153   : > { %v809_v21 = vpop.permute.xlu1 %808  ;;  %v551_v33 = vpop.permute.xlu0 %550 }
 0x154   : > { %v972_v23 = vsel %vm967_vm7, %v955_v32, %v809_v21  ;;  %v903_v41 = vsel %vm899_vm3, %v886_v26, %v551_v33 }
 0x155   : > { %1384 = vmatpush3.xpose.msk.msra.mxu0 %vm991_vm8, %v972_v23 }
 0x156   : > { %1385 = vmatprep.subr.mxu0 %v1578_v6 }
 0x157   : > { %v615_v22 = vpop.permute.xlu1 %614  ;;  %v357_v24 = vpop.permute.xlu0 %356 }
 0x158   : > { %v920_v42 = vsel %vm916_vm4, %v903_v41, %v615_v22  ;;  %v851_v49 = vsel %vm848_vm0, %v2121_v5, %v357_v24 }
 0x15b   : > { %v679_v35 = vpop.permute.xlu1 %678  ;;  %v421_v36 = vpop.permute.xlu0 %420 }
 0x15c   : > { %v937_v34 = vsel %vm933_vm5, %v920_v42, %v679_v35  ;;  %v868_v50 = vsel %vm865_vm1, %v851_v49, %v421_v36 }
 0x15f   : > { %v743_v27 = vpop.permute.xlu1 %742  ;;  %v485_v39 = vpop.permute.xlu0 %484 }
 0x160   : > { %v954_v37 = vsel %vm950_vm6, %v937_v34, %v743_v27  ;;  %v885_v52 = vsel %vm882_vm2, %v868_v50, %v485_v39 }
 0x163   : > { %v807_v18 = vpop.permute.xlu1 %806  ;;  %v549_v43 = vpop.permute.xlu0 %548 }
 0x164   : > { %v971_v44 = vsel %vm967_vm7, %v954_v37, %v807_v18  ;;  %v902_v56 = vsel %vm899_vm3, %v885_v52, %v549_v43 }
 0x165   : > { %1386 = vmatpush3.xpose.msk.msra.mxu0 %vm991_vm8, %v971_v44 }
 0x166   : > { %1387 = vmatprep.subr.mxu0 %v1578_v6 }
 0x167   : > { %v613_v51 = vpop.permute.xlu1 %612  ;;  %v355_v46 = vpop.permute.xlu0 %354 }
 0x168   : > { %v919_v57 = vsel %vm916_vm4, %v902_v56, %v613_v51  ;;  %v850_v1 = vsel %vm848_vm0, %v187_v54, %v355_v46 }
 0x16b   : > { %v677_v48 = vpop.permute.xlu1 %676  ;;  %v419_v40 = vpop.permute.xlu0 %418 }
 0x16c   : > { %v936_v28 = vsel %vm933_vm5, %v919_v57, %v677_v48  ;;  %v867_v3 = vsel %vm865_vm1, %v850_v1, %v419_v40 }
 0x16f   : > { %v741_v53 = vpop.permute.xlu1 %740  ;;  %v483_v55 = vpop.permute.xlu0 %482 }
 0x170   : > { %v953_v58 = vsel %vm950_vm6, %v936_v28, %v741_v53  ;;  %v884_v59 = vsel %vm882_vm2, %v867_v3, %v483_v55 }
 0x173   : > { %v805_v60 = vpop.permute.xlu1 %804  ;;  %v547_v47 = vpop.permute.xlu0 %546 }
 0x174   : > { %v970_v5 = vsel %vm967_vm7, %v953_v58, %v805_v60  ;;  %v901_v7 = vsel %vm899_vm3, %v884_v59, %v547_v47 }
 0x175   : > { %1388 = vmatpush3.xpose.msk.msra.mxu0 %vm991_vm8, %v970_v5 }
 0x176   : > { %1389 = vmatprep.subr.mxu0 %v1578_v6 }
 0x177   : > { %v611_v61 = vpop.permute.xlu1 %610  ;;  %v353_v45 = vpop.permute.xlu0 %352 }
 0x178   : > { %v918_v8 = vsel %vm916_vm4, %v901_v7, %v611_v61  ;;  %v849_v13 = vsel %vm848_vm0, %v186_v30, %v353_v45 }
 0x17b   : > { %v675_v63 = vpop.permute.xlu1 %674  ;;  %v417_v0 = vpop.permute.xlu0 %416 }
 0x17c   : > { %v935_v9 = vsel %vm933_vm5, %v918_v8, %v675_v63  ;;  %v866_v14 = vsel %vm865_vm1, %v849_v13, %v417_v0 }
 0x17f   : > { %v739_v4 = vpop.permute.xlu1 %738  ;;  %v481_v29 = vpop.permute.xlu0 %480 }
 0x180   : > { %v952_v11 = vsel %vm950_vm6, %v935_v9, %v739_v4  ;;  %v883_v62 = vsel %vm882_vm2, %v866_v14, %v481_v29 }
 0x183   : > { %v803_v2 = vpop.permute.xlu1 %802  ;;  %v545_v12 = vpop.permute.xlu0 %544 }
 0x184   : > { %v969_v31 = vsel %vm967_vm7, %v952_v11, %v803_v2  ;;  %v900_v10 = vsel %vm899_vm3, %v883_v62, %v545_v12 }
 0x185   : > { %1390 = vmatpush3.xpose.msk.msra.mxu0 %vm991_vm8, %v969_v31 }
 0x186   : > { %1391 = vmatprep.subr.mxu0 %v1578_v6  ;;  %v984_v6 = vld [vmem:[%s2292_s1] sm:$0xff] }
 0x187   : > { %v609_v16 = vpop.permute.xlu0 %608 }
 0x188   : > { %v917_v17 = vsel %vm916_vm4, %v900_v10, %v609_v16  ;;  %v673_v19 = vpop.permute.xlu1 %672 }
 0x189   : > { %v934_v20 = vsel %vm933_vm5, %v917_v17, %v673_v19 }
 0x18b   : > { %v737_v15 = vpop.permute.xlu0 %736 }
 0x18c   : > { %v951_v32 = vsel %vm950_vm6, %v934_v20, %v737_v15  ;;  %v801_v21 = vpop.permute.xlu1 %800 }
 0x18d   : > { %v968_v33 = vsel %vm967_vm7, %v951_v32, %v801_v21 }
 0x18e   : > { %1392 = vmatpush3.xpose.msk.msra.mxu0 %vm991_vm8, %v968_v33 }
 0x191   : > { %1394 = vmatmul.mubr.msk.f32.vlgmr.msra.gmra.mxu0 %vm991_vm8, %v984_v6 }
 0x198   : > { %v989_v23 = vpop.permute.xlu0 %988 }
 0x251   : > { %v1109_v22 = vpop.f32.mrf.mxu0 }
 0x252   : > { %v1110_v24 = vadd.f32 %v1109_v22, %v989_v23 }
 0x253   : > { %v1395_v35 = vpop.f32.mrf.mxu0 }
 0x254   : > { %v1113_v36 = vmax.f32 %v1110_v24, 0.0 }
 0x256   : > { %1114 = vst [vmem:[%s177_s24] sm:$0xff] %v1113_v36 }
 0x257   : > { %1493 = shalt.err (!%p1490_p6)
}
 0x258   : > { %s1494_s8 = scalar_lea.hbm %s1129_s4, 128  ;;  %s1498_s11 = scalar_lea.hbm %s2294_s3, 512 }
 0x259   : > { %p1495_p7 = scmp.ne.s32.totalorder %s1129_s4, %s1494_s8  ;;  %p1499_p11 = scmp.lt.s32.totalorder %s1129_s4, %s2294_s3 }
 0x25a   : > { %p1500_p12 = scmp.lt.s32.totalorder %s1498_s11, %s1494_s8 }
 0x25b   : > { %p1496_p9 = pnand %p1495_p7, %p1657_p3 }
 0x25c   : > { %p1501_p13 = por %p1500_p12, %p1499_p11 }
 0x25d   : > { %p1497_p10 = pneg %p1496_p9 }
 0x25f   : > { %p1502_p0 = pnand %p1501_p13, %p1497_p10 }
 0x261   : > { %1505 = shalt.err (!%p1502_p0)
}
 0x262   : > { %1397 = dma.vmem_to_hbm [thread:$0]  (%p1657_p3), %s1132_s27, 128, %s1129_s4, %s1116_s5  }
 0x263 PF: > { %p1403_p1 = scmp.ge.s32.totalorder %s1572_s19, 2  ;;  %s1143_s24 = sand.u32 1, %s1544_s12  }
 0x264   : > { %s1144_s28 = scalar_lea.sflag [#allocation3], %s1143_s24 }
 0x265   : > { %p1400_p2 = pnand %p1403_p1, %p1666_p8 }
 0x267   : > { %p1401_p4 = pneg %p1400_p2 }
 0x269   : > { %1539 = dma.done.wait (%p1401_p4), %s1144_s28, 128  }
 0x26a   : > { %1541 = vsyncadd (%p1401_p4), %s1144_s28, 4294967168  ;;  %s16_s19 = sadd.s32 1, %s1572_s19   ;;  %s2297_s12 = smov %s1548_s13 }
 0x26b   : > { %p13_p5 = scmp.ge.s32.totalorder %s16_s19, 6   ;;  %s2298_s13 = smov %s1552_s14 }
 0x26c   : > { %s2299_s14 = smov %s1675_s30  ;;  %s2300_s15 = smov %s1564_s17 }
 0x26d   : > { %s2301_s16 = smov %s1568_s18  ;;  %s2302_s17 = smov %s2305_s22 }
 0x26e   : > { %s2303_s18 = smov %s2309_s23  ;;  %15 = sbr.rel (!%p13_p5) target bundleno = 5 (0x5), region = 70 }
 0x273   :  { %1149 = vsyncpa [#allocation3], 1 }
 0x274   :  { %1151 = vsyncpa [#allocation3 + $0x1], 1 }

</bundles_post_ra>
